<compile_context>
chip_gen: v5e
topology: v5e:2x2
jax: 0.10.0
libtpu: 0.0.40
codegen_flags: <defaults>
</compile_context>

<pallas_src>
import jax
import jax.numpy as jnp
from jax import lax
from jax.experimental import pallas as pl
from jax.experimental.pallas import tpu as pltpu


# ----------------------------------------------------------------------------
# JAX mirrors of the PyTorch Function tree (operate on traced values, so they
# can be evaluated inside the Pallas kernel body).
# ----------------------------------------------------------------------------
class Function:
    def __call__(self, *args, **kwargs):
        return self.forward(*args, **kwargs)


class BinOp(Function):
    def __init__(self, f, g):
        self.f = f
        self.g = g


class Add(BinOp):
    def forward(self, *args, **kwargs):
        return self.f(*args, **kwargs) + self.g(*args, **kwargs)


class Sub(BinOp):
    def forward(self, *args, **kwargs):
        return self.f(*args, **kwargs) - self.g(*args, **kwargs)


class Mul(BinOp):
    def forward(self, *args, **kwargs):
        return self.f(*args, **kwargs) * self.g(*args, **kwargs)


class TrueDiv(BinOp):
    # Exact divide keeps parity with PyTorch semantics; the EUP is not the
    # bottleneck for this mem-bound kernel, so no approx-reciprocal needed.
    def forward(self, *args, **kwargs):
        return self.f(*args, **kwargs) / self.g(*args, **kwargs)


class Pow(Function):
    def __init__(self, p):
        self.p = p

    def forward(self, x):
        p = self.p
        if isinstance(p, (int, float)):
            fp = float(p)
            if fp == 1.0:
                return x                              # identity
            if fp.is_integer():
                return lax.integer_pow(x, int(fp))    # VPU multiplies, no EUP
            if fp == 0.5:
                return jnp.sqrt(x)                    # single EUP op
            if fp == -0.5:
                return lax.rsqrt(x)
        return x ** p                                  # generic exp/log path

    def inv(self):
        return Pow(1.0 / self.p)


class Compose(Function):
    def __init__(self, f, *args, **kwargs):
        self.f = f
        self.args = list(args)
        self.kwargs = dict(kwargs)

    def forward(self, *args, **kwargs):
        return self.f(
            *[v(*args, **kwargs) for v in self.args],
            **{k: v(*args, **kwargs) for k, v in self.kwargs.items()},
        )


# Deterministic concrete Compose instance (the module has no learned params).
COMPOSE = Compose(
    Pow(0.5),
    Add(Mul(Pow(2.0), Pow(1.0)), TrueDiv(Pow(3.0), Pow(1.0))),
)


# ----------------------------------------------------------------------------
# Pallas kernel: evaluate the composed expression on one VMEM tile.
# ----------------------------------------------------------------------------
def compose_kernel(x_ref, o_ref):
    # Whole Compose forward is traced here -> fused elementwise expression
    # (VPU multiplies/adds/divide + one EUP sqrt) per tile.
    o_ref[...] = COMPOSE(x_ref[...])


_LANES = 1024                     # lane-dense slab width (8 vregs wide)
_MAX_BLOCK_BYTES = 2 << 20        # 2 MiB per tile; 4x (double-buffered in+out)
                                  # stays inside v5e's 16 MiB scoped-VMEM default


def _choose_layout(total, dtype_bytes):
    """Return (rows, tile_rows) for a padded (rows, _LANES) slab."""
    rows_needed = pl.cdiv(total, _LANES)
    max_rows = max(8, _MAX_BLOCK_BYTES // (_LANES * dtype_bytes))
    if rows_needed <= max_rows:
        # Single full-extent block (block_shape == array shape, so no (8,128)
        # divisibility requirement).
        return rows_needed, rows_needed
    tile_rows = (max_rows // 8) * 8
    rows = pl.cdiv(rows_needed, tile_rows) * tile_rows
    return rows, tile_rows


def compose_pallas(x):
    """Apply COMPOSE.forward elementwise to a tensor of any shape via Pallas."""
    orig_shape = x.shape
    total = x.size
    dtype_bytes = jnp.dtype(x.dtype).itemsize
    rows, tile_rows = _choose_layout(total, dtype_bytes)
    padded_total = rows * _LANES

    flat = x.reshape(total)
    if padded_total != total:
        # Pad with 1.0 so TrueDiv / fractional Pow stay well-defined on the
        # (discarded) tail elements.
        flat = jnp.pad(flat, (0, padded_total - total), constant_values=1.0)
    x2d = flat.reshape(rows, _LANES)

    grid = (rows // tile_rows,)

    cost = pl.CostEstimate(
        flops=6 * padded_total,            # x*x, *x, x^3 (2 mul), /, +
        transcendentals=2 * padded_total,  # sqrt + divide reciprocal path
        bytes_accessed=2 * padded_total * dtype_bytes,
    )

    out2d = pl.pallas_call(
        compose_kernel,
        out_shape=jax.ShapeDtypeStruct((rows, _LANES), x2d.dtype),
        grid=grid,
        in_specs=[pl.BlockSpec((tile_rows, _LANES), lambda i: (i, 0))],
        out_specs=pl.BlockSpec((tile_rows, _LANES), lambda i: (i, 0)),
        compiler_params=pltpu.CompilerParams(
            dimension_semantics=("parallel",)
        ),
        cost_estimate=cost,
    )(x2d)

    out_flat = out2d.reshape(padded_total)
    if padded_total != total:
        out_flat = out_flat[:total]
    return out_flat.reshape(orig_shape)


def compose_ref(x):
    # Pure-JAX reference of the same Compose instance.
    return COMPOSE(x)


if __name__ == "__main__":
    key = jax.random.PRNGKey(0)
    # Positive inputs keep TrueDiv and the fractional Pow well-defined,
    # matching the domain the module would be used on.
    x = jax.random.uniform(
        key, (2, 4, 16, 16), dtype=jnp.float32, minval=0.5, maxval=2.0
    )

    out = compose_pallas(x)
    out = jax.block_until_ready(out)

    ref = compose_ref(x)
    assert out.shape == x.shape and out.dtype == x.dtype
    assert jnp.allclose(out, ref, rtol=1e-5, atol=1e-5), "mismatch vs reference"

    print("KERNEL_OK")
</pallas_src>

<mosaic_0001>
module attributes {stable_mosaic.version = 11 : i64} {
  func.func @compose_kernel(%arg0: i32, %arg1: memref<2x1024xf32, #tpu.memory_space<vmem>>, %arg2: memref<2x1024xf32, #tpu.memory_space<vmem>>) attributes {dimension_semantics = [#tpu.dimension_semantics<parallel>], iteration_bounds = array<i64: 1>, scalar_prefetch = 0 : i64, scratch_operands = 0 : i64, tpu.core_type = #tpu.core_type<tc>, window_params = [{transform_indices = @transform_0, window_bounds = array<i64: 2, 1024>}, {transform_indices = @transform_1, window_bounds = array<i64: 2, 1024>}]} {
    %c0 = arith.constant 0 : index
    %c0_0 = arith.constant 0 : index
    %0 = vector.load %arg1[%c0, %c0_0] : memref<2x1024xf32, #tpu.memory_space<vmem>>, vector<2x1024xf32>
    %1 = arith.mulf %0, %0 : vector<2x1024xf32>
    %2 = arith.mulf %1, %0 : vector<2x1024xf32>
    %3 = arith.mulf %0, %0 : vector<2x1024xf32>
    %4 = arith.mulf %0, %3 : vector<2x1024xf32>
    %5 = arith.divf %4, %0 : vector<2x1024xf32>
    %6 = arith.addf %2, %5 : vector<2x1024xf32>
    %7 = math.sqrt %6 : vector<2x1024xf32>
    %c0_1 = arith.constant 0 : index
    %c0_2 = arith.constant 0 : index
    %8 = vector.load %arg2[%c0_1, %c0_2] : memref<2x1024xf32, #tpu.memory_space<vmem>>, vector<2x1024xf32>
    tpu.vector_store %arg2[%c0_1, %c0_2], %7 {strides = array<i32>} : memref<2x1024xf32, #tpu.memory_space<vmem>>, vector<2x1024xf32>,
    return
  }
  func.func @transform_0(%arg0: i32) -> (i32, i32) {
    %c0_i32 = arith.constant 0 : i32
    %c0_i32_0 = arith.constant 0 : i32
    return %arg0, %c0_i32 : i32, i32
  }
  func.func @transform_1(%arg0: i32) -> (i32, i32) {
    %c0_i32 = arith.constant 0 : i32
    %c0_i32_0 = arith.constant 0 : i32
    return %arg0, %c0_i32 : i32, i32
  }
}

</mosaic_0001>

<bundles_post_ra>
// kernel: tpu_custom_call.1
= control target key start
LH: loop header
LB: loop body
LE: loop exit
PB: predicated region body
PF: predicated region fallthrough
CT: control target
= control target key end

     0   :  { %6 = vsyncpa [#allocation3], 0  ;;  %s184_s0 = inlined_call_operand.hbm [shape: f32[2,1024], index: 0, kind: input, shape index: {}]   ;;  %s185_s1 = inlined_call_operand.hbm [shape: f32[2,1024], index: 1, kind: output, shape index: {}]  }
   0x1   :  { %7 = vsyncpa [#allocation4], 0  ;;  %s13_s8 = sshll.u32 %s184_s0, 4  ;;  %s166_s9 = smov [#allocation2]   ;;  %s14_s8 = int_to_ptr.hbm [resolvable:$true] %s13_s8 }
   0x2   :  { %s15_s10 = sshll.u32 %s166_s9, 4  ;;  %s16_s10 = int_to_ptr.vmem [resolvable:$true] %s15_s10 }
   0x3   :  { %18 = dma.hbm_to_vmem [thread:$0]  %s14_s8, 256, %s16_s10, [#allocation3]  }
   0x4   :  { %162 = dma.done.wait [#allocation3], 256  }
   0x5   :  { %163 = vsyncadd [#allocation3], 4294967040  ;;  %v23_v0 = vld [vmem:[#allocation2] sm:$0xff]  ;;  %v24_v1 = vld [vmem:[#allocation2 + $0x8] sm:$0xff]  ;;  %s167_s0 = smov [#allocation5]   ;;  %s94_s14 = sshll.u32 %s185_s1, 4  ;;  %s95_s14 = int_to_ptr.hbm [resolvable:$true] %s94_s14 }
   0x6   :  { %106 = vrcp.f32 %v23_v0  ;;  %v25_v4 = vmul.f32 %v23_v0, %v23_v0  ;;  %vm34_vm0 = vweird.f32 %v23_v0  ;;  %v38_v6 = vand.u32 2147483647, %v23_v0  ;;  %s92_s11 = sshll.u32 %s167_s0, 4  ;;  %s93_s11 = int_to_ptr.vmem [resolvable:$true] %s92_s11 }
   0x7   :  { %108 = vrcp.f32 %v24_v1  ;;  %v40_v7 = vand.u32 2147483648, %v23_v0  ;;  %v26_v10 = vmul.f32 %v24_v1, %v24_v1  ;;  %v55_v11 = vand.u32 2147483648, %v24_v1 }
   0x8   :  { %vm49_vm2 = vweird.f32 %v24_v1  ;;  %v53_v13 = vand.u32 2147483647, %v24_v1  ;;  %v27_v17 = vmul.f32 %v25_v4, %v23_v0  ;;  %vm39_vm5 = vcmp.eq.f32.partialorder %v38_v6, 8.507059e+37 }
   0x9   :  { %v41_v15 = vor.u32 1.1754944e-38, %v40_v7  ;;  %v56_v19 = vor.u32 1.1754944e-38, %v55_v11  ;;  %v28_v20 = vmul.f32 %v26_v10, %v24_v1 }
   0xa   :  { %vm54_vm7 = vcmp.eq.f32.partialorder %v53_v13, 8.507059e+37 }
   0xc   :  { %v107_v2 = vpop.eup %106 }
   0xd   :  { %v109_v3 = vpop.eup %108  ;;  %v30_v5 = vmul.f32 %v107_v2, %v23_v0  ;;  %vm35_vm1 = vweird.f32 %v107_v2 }
   0xe   :  { %v45_v8 = vmul.f32 %v109_v3, %v24_v1  ;;  %vm50_vm3 = vweird.f32 %v109_v3  ;;  %vm36_vm4 = vmor %vm34_vm0, %vm35_vm1 }
   0xf   :  { %v31_v9 = vsub.f32 1.0, %v30_v5  ;;  %vm51_vm6 = vmor %vm49_vm2, %vm50_vm3 }
  0x10   :  { %v46_v12 = vsub.f32 1.0, %v45_v8 }
  0x11   :  { %v32_v14 = vmul.f32 %v107_v2, %v31_v9 }
  0x12   :  { %v47_v16 = vmul.f32 %v109_v3, %v46_v12 }
  0x13   :  { %v33_v18 = vadd.f32 %v107_v2, %v32_v14 }
  0x14   :  { %v48_v21 = vadd.f32 %v109_v3, %v47_v16 }
  0x15   :  { %v37_v22 = vsel %vm36_vm4, %v107_v2, %v33_v18 }
  0x16   :  { %v42_v23 = vsel %vm39_vm5, %v41_v15, %v37_v22  ;;  %v52_v24 = vsel %vm51_vm6, %v109_v3, %v48_v21 }
  0x17   :  { %v43_v25 = vmul.f32 %v42_v23, %v27_v17  ;;  %v57_v26 = vsel %vm54_vm7, %v56_v19, %v52_v24 }
  0x18   :  { %v58_v27 = vmul.f32 %v57_v26, %v28_v20 }
  0x19   :  { %v59_v28 = vadd.f32 %v43_v25, %v27_v17 }
  0x1a   :  { %v60_v29 = vadd.f32 %v58_v27, %v28_v20 }
  0x1b   :  { %110 = vrsqrt.f32 %v59_v28  ;;  %vm68_vm8 = vcmp.eq.f32.partialorder %v59_v28, inf  ;;  %v71_v41 = vand.u32 2147483648, %v59_v28  ;;  %vm70_vm9 = vcmp.eq.f32.partialorder %v59_v28, 0.0 }
  0x1c   :  { %112 = vrsqrt.f32 %v60_v29  ;;  %vm80_vm10 = vcmp.eq.f32.partialorder %v60_v29, inf  ;;  %v83_v44 = vand.u32 2147483648, %v60_v29  ;;  %vm82_vm11 = vcmp.eq.f32.partialorder %v60_v29, 0.0 }
  0x21   :  { %v111_v30 = vpop.eup %110 }
  0x22   :  { %v113_v31 = vpop.eup %112  ;;  %v62_v32 = vmul.f32 %v111_v30, %v59_v28 }
  0x23   :  { %v74_v33 = vmul.f32 %v113_v31, %v60_v29 }
  0x24   :  { %v63_v34 = vmul.f32 %v111_v30, %v62_v32 }
  0x25   :  { %v75_v35 = vmul.f32 %v113_v31, %v74_v33 }
  0x26   :  { %v64_v36 = vmul.f32 0.5, %v63_v34 }
  0x27   :  { %v76_v37 = vmul.f32 0.5, %v75_v35 }
  0x28   :  { %v65_v38 = vsub.f32 1.5, %v64_v36 }
  0x29   :  { %v77_v39 = vsub.f32 1.5, %v76_v37 }
  0x2a   :  { %v66_v40 = vmul.f32 %v111_v30, %v65_v38 }
  0x2b   :  { %v78_v42 = vmul.f32 %v113_v31, %v77_v39 }
  0x2c   :  { %v67_v43 = vmul.f32 %v66_v40, %v59_v28 }
  0x2d   :  { %v79_v45 = vmul.f32 %v78_v42, %v60_v29 }
  0x2e   :  { %v69_v46 = vsel %vm68_vm8, %v59_v28, %v67_v43 }
  0x2f   :  { %v72_v47 = vsel %vm70_vm9, %v71_v41, %v69_v46  ;;  %v81_v48 = vsel %vm80_vm10, %v60_v29, %v79_v45 }
  0x30   :  { %85 = vst [vmem:[#allocation5] sm:$0xff] %v72_v47  ;;  %v84_v49 = vsel %vm82_vm11, %v83_v44, %v81_v48 }
  0x31   :  { %86 = vst [vmem:[#allocation5 + $0x8] sm:$0xff] %v84_v49 }
  0x32   :  { %97 = dma.vmem_to_hbm [thread:$0]  %s93_s11, 256, %s95_s14, [#allocation4]  }
  0x33   :  { %164 = dma.done.wait [#allocation4], 256  }
  0x34   :  { %165 = vsyncadd [#allocation4], 4294967040 }
  0x35   :  { %102 = vsyncpa [#allocation3], 1 }
  0x36   :  { %103 = vsyncpa [#allocation4], 1 }

</bundles_post_ra>
